<compile_context>
chip_gen: v7x
topology: tpu7x:2x2x1
jax: 0.10.0
libtpu: 0.0.40
codegen_flags: <defaults>
</compile_context>

<pallas_src>
import math

import jax
import jax.numpy as jnp
from jax.experimental import pallas as pl
from jax.experimental.pallas import tpu as pltpu

W_BITS = 256.0  # default w_bits in t.forward(train=True)


# ----------------------------------------------------------------------------
# Fused kernel: fake-quant(W tile) -> MXU matmul accumulate -> bias add,
# plus per-tile max|x| bookkeeping. Grid = (batch tiles, out-feature tiles, K tiles).
# ----------------------------------------------------------------------------
def _fused_fq_matmul_kernel(s_ref, x_ref, w_ref, b_ref, o_ref, xmax_ref, acc_ref):
    k = pl.program_id(2)
    nk = pl.num_programs(2)

    @pl.when(k == 0)
    def _init_acc():
        acc_ref[...] = jnp.zeros_like(acc_ref)

    # Fused per-tensor weight fake-quant: FQ(w) = s * clip(round((1/s) * w), -127, 127).
    # (The PyTorch reference also computes 1/s * x, so this matches it exactly.)
    s = s_ref[0]
    inv_s = 1.0 / s
    q = jnp.clip(jnp.round(w_ref[...] * inv_s), -127.0, 127.0)
    acc_ref[...] += jnp.dot(x_ref[...], s * q, preferred_element_type=jnp.float32)

    # Running-max |x| bookkeeping folded into the kernel (x tile is already in VMEM).
    ax = jnp.abs(x_ref[...])
    tmax = jnp.max(jnp.max(ax, axis=1, keepdims=True), axis=0, keepdims=True)  # (1, 1)
    tmax = jnp.broadcast_to(tmax, xmax_ref.shape)

    @pl.when(k == 0)
    def _xmax_init():
        xmax_ref[...] = tmax

    @pl.when(k > 0)
    def _xmax_acc():
        xmax_ref[...] = jnp.maximum(xmax_ref[...], tmax)

    @pl.when(k == nk - 1)
    def _store():
        o_ref[...] = (acc_ref[...] + b_ref[...]).astype(o_ref.dtype)


# ----------------------------------------------------------------------------
# Helpers
# ----------------------------------------------------------------------------
def _round_up(a, b):
    return (a + b - 1) // b * b


def _pick_tile(dim_pad, pref, base):
    """Largest tile <= pref that divides dim_pad (dim_pad is a multiple of base)."""
    if dim_pad <= pref:
        return dim_pad
    t = pref
    while dim_pad % t != 0:
        t -= base
    return t


# ----------------------------------------------------------------------------
# Train-mode forward of module `t`. Returns (out, max_abs_x).
# ----------------------------------------------------------------------------
def t_forward(xb, weights, bias, *, w_bits=W_BITS):
    xb = xb.astype(jnp.float32)
    weights = weights.astype(jnp.float32)
    bias = bias.astype(jnp.float32)

    B, X = xb.shape
    Xw, Y = weights.shape
    assert X == Xw and bias.shape == (Y,)

    # Per-tensor weight scale computed once in the wrapper (full |W| reduce happens
    # exactly once). Guard against all-zero W (reference would produce inf/nan there).
    s_w = 2.0 * jnp.max(jnp.abs(weights)) / jnp.float32(w_bits)
    s_w = jnp.maximum(s_w, jnp.float32(1e-30)).reshape(1)

    # Pad to lane/sublane-friendly sizes so all blocks are (8,128)-aligned and the
    # output store is lane-dense (no masked partial stores).
    B_pad = _round_up(B, 8)
    X_pad = _round_up(X, 128)
    Y_pad = _round_up(Y, 128)

    # 256x256 (M,N) x 512 (K) tiles when shapes allow (v6e/v7x MXU is 256-wide;
    # on v5e 128 would suffice but 256 is still correct and VMEM-cheap here).
    tm = _pick_tile(B_pad, 256, 8)
    tn = _pick_tile(Y_pad, 256, 128)
    tk = _pick_tile(X_pad, 512, 128)

    xb_p = jnp.pad(xb, ((0, B_pad - B), (0, X_pad - X)))
    w_p = jnp.pad(weights, ((0, X_pad - X), (0, Y_pad - Y)))
    b_p = jnp.pad(bias, (0, Y_pad - Y)).reshape(1, Y_pad)

    ni, nj, nk = B_pad // tm, Y_pad // tn, X_pad // tk

    # VMEM budget from the actual tile footprint (double-buffered inputs/outputs +
    # accumulator), capped at 48 MiB so we never request v7x's whole 64 MiB.
    tile_bytes = 4 * (2 * (tm * tk + tk * tn + tn + tm * tn + 8 * 128) + tm * tn)
    vmem_limit = int(min(max(2 * tile_bytes + (8 << 20), 16 << 20), 48 << 20))

    out_p, xmax = pl.pallas_call(
        _fused_fq_matmul_kernel,
        out_shape=(
            jax.ShapeDtypeStruct((B_pad, Y_pad), jnp.float32),
            jax.ShapeDtypeStruct((ni * 8, nj * 128), jnp.float32),
        ),
        grid=(ni, nj, nk),
        in_specs=[
            pl.BlockSpec(memory_space=pltpu.MemorySpace.SMEM),      # s_w scalar, shape (1,)
            pl.BlockSpec((tm, tk), lambda i, j, k: (i, k)),         # xb tile
            pl.BlockSpec((tk, tn), lambda i, j, k: (k, j)),         # raw weight tile
            pl.BlockSpec((1, tn), lambda i, j, k: (0, j)),          # bias row tile
        ],
        out_specs=(
            pl.BlockSpec((tm, tn), lambda i, j, k: (i, j)),         # output tile
            pl.BlockSpec((8, 128), lambda i, j, k: (i, j)),         # per-(i,j) max|x|
        ),
        scratch_shapes=[pltpu.VMEM((tm, tn), jnp.float32)],
        compiler_params=pltpu.CompilerParams(
            dimension_semantics=("parallel", "parallel", "arbitrary"),
            vmem_limit_bytes=vmem_limit,
        ),
    )(s_w, xb_p, w_p, b_p)

    out = out_p[:B, :Y]
    # Tiny reduce of the per-tile maxima (padded rows/cols of xb are zeros, so they
    # cannot change max|xb|).
    curr = jnp.max(xmax)
    return out, curr


if __name__ == "__main__":
    key = jax.random.PRNGKey(0)
    kx, kw = jax.random.split(key)

    B, X, Y = 8, 32, 16  # batch, x_size, y_size
    xb = jax.random.normal(kx, (B, X), dtype=jnp.float32)
    # deterministic "torch.randn(x_size, y_size) / sqrt(x_size)" analogue
    weights = jax.random.normal(kw, (X, Y), dtype=jnp.float32) / math.sqrt(X)
    bias = jnp.zeros((Y,), dtype=jnp.float32)

    out, max_x = jax.jit(t_forward)(xb, weights, bias)
    jax.block_until_ready((out, max_x))

    # Reference check (plain JAX, same math as the PyTorch train path).
    s_w_ref = 2.0 * jnp.max(jnp.abs(weights)) / W_BITS
    fq_w_ref = s_w_ref * jnp.clip(jnp.round(weights * (1.0 / s_w_ref)), -127.0, 127.0)
    ref = xb @ fq_w_ref + bias
    assert jnp.allclose(out, ref, atol=1e-5, rtol=1e-5)
    assert jnp.allclose(max_x, jnp.max(jnp.abs(xb)))

    print("KERNEL_OK")
</pallas_src>

<mosaic_0001>
module attributes {stable_mosaic.version = 11 : i64} {
  func.func @_fused_fq_matmul_kernel(%arg0: i32, %arg1: i32, %arg2: i32, %arg3: memref<1xf32, #tpu.memory_space<smem>>, %arg4: memref<8x128xf32, #tpu.memory_space<vmem>>, %arg5: memref<128x128xf32, #tpu.memory_space<vmem>>, %arg6: memref<1x128xf32, #tpu.memory_space<vmem>>, %arg7: memref<8x128xf32, #tpu.memory_space<vmem>>, %arg8: memref<8x128xf32, #tpu.memory_space<vmem>>, %arg9: memref<8x128xf32, #tpu.memory_space<vmem>>) attributes {dimension_semantics = [#tpu.dimension_semantics<parallel>, #tpu.dimension_semantics<parallel>, #tpu.dimension_semantics<arbitrary>], iteration_bounds = array<i64: 1, 1, 1>, scalar_prefetch = 0 : i64, scratch_operands = 1 : i64, tpu.core_type = #tpu.core_type<tc>, window_params = [{transform_indices = @transform_0, window_bounds = array<i64: 1>}, {transform_indices = @transform_1, window_bounds = array<i64: 8, 128>}, {transform_indices = @transform_2, window_bounds = array<i64: 128, 128>}, {transform_indices = @transform_3, window_bounds = array<i64: 1, 128>}, {transform_indices = @transform_4, window_bounds = array<i64: 8, 128>}, {transform_indices = @transform_5, window_bounds = array<i64: 8, 128>}]} {
    %c0_i32 = arith.constant 0 : i32
    %0 = arith.cmpi eq, %arg2, %c0_i32 : i32
    %1 = arith.extui %0 : i1 to i32
    %c0_i32_0 = arith.constant 0 : i32
    %2 = arith.cmpi ne, %1, %c0_i32_0 : i32
    scf.if %2 {
      %cst_22 = arith.constant 0.000000e+00 : f32
      %37 = vector.broadcast %cst_22 : f32 to vector<8x128xf32>
      %c0_23 = arith.constant 0 : index
      %c0_24 = arith.constant 0 : index
      %38 = vector.load %arg9[%c0_23, %c0_24] : memref<8x128xf32, #tpu.memory_space<vmem>>, vector<8x128xf32>
      tpu.vector_store %arg9[%c0_23, %c0_24], %37 {strides = array<i32>} : memref<8x128xf32, #tpu.memory_space<vmem>>, vector<8x128xf32>,
    } else {
    }
    %c0 = arith.constant 0 : index
    %3 = memref.load %arg3[%c0] : memref<1xf32, #tpu.memory_space<smem>>
    %cst = arith.constant 1.000000e+00 : f32
    %4 = arith.divf %cst, %3 : f32
    %c0_1 = arith.constant 0 : index
    %c0_2 = arith.constant 0 : index
    %5 = vector.load %arg5[%c0_1, %c0_2] : memref<128x128xf32, #tpu.memory_space<vmem>>, vector<128x128xf32>
    %6 = vector.broadcast %4 : f32 to vector<128x128xf32>
    %7 = arith.mulf %5, %6 : vector<128x128xf32>
    %8 = math.roundeven %7 : vector<128x128xf32>
    %cst_3 = arith.constant -1.270000e+02 : f32
    %cst_4 = arith.constant 1.270000e+02 : f32
    %9 = vector.broadcast %cst_3 : f32 to vector<128x128xf32>
    %10 = arith.maximumf %9, %8 : vector<128x128xf32>
    %11 = vector.broadcast %cst_4 : f32 to vector<128x128xf32>
    %12 = arith.minimumf %11, %10 : vector<128x128xf32>
    %c0_5 = arith.constant 0 : index
    %c0_6 = arith.constant 0 : index
    %13 = vector.load %arg9[%c0_5, %c0_6] : memref<8x128xf32, #tpu.memory_space<vmem>>, vector<8x128xf32>
    %c0_7 = arith.constant 0 : index
    %c0_8 = arith.constant 0 : index
    %14 = vector.load %arg4[%c0_7, %c0_8] : memref<8x128xf32, #tpu.memory_space<vmem>>, vector<8x128xf32>
    %15 = vector.broadcast %3 : f32 to vector<128x128xf32>
    %16 = arith.mulf %15, %12 : vector<128x128xf32>
    %cst_9 = arith.constant dense<0.000000e+00> : vector<8x128xf32>
    %17 = tpu.matmul %14, %16, %cst_9 {dimension_numbers = #tpu.dot_dimension_numbers<[1], [0], [0], [1], [0, 0, 1, 1], [], []>} : vector<8x128xf32>, vector<128x128xf32>, vector<8x128xf32> -> vector<8x128xf32>
    %18 = arith.addf %13, %17 : vector<8x128xf32>
    %c0_10 = arith.constant 0 : index
    %c0_11 = arith.constant 0 : index
    %19 = vector.load %arg9[%c0_10, %c0_11] : memref<8x128xf32, #tpu.memory_space<vmem>>, vector<8x128xf32>
    tpu.vector_store %arg9[%c0_10, %c0_11], %18 {strides = array<i32>} : memref<8x128xf32, #tpu.memory_space<vmem>>, vector<8x128xf32>,
    %c0_12 = arith.constant 0 : index
    %c0_13 = arith.constant 0 : index
    %20 = vector.load %arg4[%c0_12, %c0_13] : memref<8x128xf32, #tpu.memory_space<vmem>>, vector<8x128xf32>
    %21 = math.absf %20 : vector<8x128xf32>
    %cst_14 = arith.constant dense<0xFF800000> : vector<8xf32>
    %22 = vector.multi_reduction <maximumf>, %21, %cst_14 [1] : vector<8x128xf32> to vector<8xf32>
    %23 = vector.shape_cast %22 : vector<8xf32> to vector<8x1xf32>
    %cst_15 = arith.constant dense<0xFF800000> : vector<1xf32>
    %24 = vector.multi_reduction <maximumf>, %23, %cst_15 [0] : vector<8x1xf32> to vector<1xf32>
    %25 = vector.shape_cast %24 : vector<1xf32> to vector<1x1xf32>
    %26 = vector.shape_cast %25 : vector<1x1xf32> to vector<1x1xf32>
    %27 = vector.broadcast %26 : vector<1x1xf32> to vector<8x128xf32>
    %c0_i32_16 = arith.constant 0 : i32
    %28 = arith.cmpi eq, %arg2, %c0_i32_16 : i32
    %29 = arith.extui %28 : i1 to i32
    %c0_i32_17 = arith.constant 0 : i32
    %30 = arith.cmpi ne, %29, %c0_i32_17 : i32
    scf.if %30 {
      %c0_22 = arith.constant 0 : index
      %c0_23 = arith.constant 0 : index
      %37 = vector.load %arg8[%c0_22, %c0_23] : memref<8x128xf32, #tpu.memory_space<vmem>>, vector<8x128xf32>
      tpu.vector_store %arg8[%c0_22, %c0_23], %27 {strides = array<i32>} : memref<8x128xf32, #tpu.memory_space<vmem>>, vector<8x128xf32>,
    } else {
    }
    %c0_i32_18 = arith.constant 0 : i32
    %31 = arith.cmpi sgt, %arg2, %c0_i32_18 : i32
    %32 = arith.extui %31 : i1 to i32
    %c0_i32_19 = arith.constant 0 : i32
    %33 = arith.cmpi ne, %32, %c0_i32_19 : i32
    scf.if %33 {
      %c0_22 = arith.constant 0 : index
      %c0_23 = arith.constant 0 : index
      %37 = vector.load %arg8[%c0_22, %c0_23] : memref<8x128xf32, #tpu.memory_space<vmem>>, vector<8x128xf32>
      %38 = arith.maximumf %37, %27 : vector<8x128xf32>
      %c0_24 = arith.constant 0 : index
      %c0_25 = arith.constant 0 : index
      %39 = vector.load %arg8[%c0_24, %c0_25] : memref<8x128xf32, #tpu.memory_space<vmem>>, vector<8x128xf32>
      tpu.vector_store %arg8[%c0_24, %c0_25], %38 {strides = array<i32>} : memref<8x128xf32, #tpu.memory_space<vmem>>, vector<8x128xf32>,
    } else {
    }
    %c0_i32_20 = arith.constant 0 : i32
    %34 = arith.cmpi eq, %arg2, %c0_i32_20 : i32
    %35 = arith.extui %34 : i1 to i32
    %c0_i32_21 = arith.constant 0 : i32
    %36 = arith.cmpi ne, %35, %c0_i32_21 : i32
    scf.if %36 {
      %c0_22 = arith.constant 0 : index
      %c0_23 = arith.constant 0 : index
      %37 = vector.load %arg9[%c0_22, %c0_23] : memref<8x128xf32, #tpu.memory_space<vmem>>, vector<8x128xf32>
      %c0_24 = arith.constant 0 : index
      %c0_25 = arith.constant 0 : index
      %38 = vector.load %arg6[%c0_24, %c0_25] : memref<1x128xf32, #tpu.memory_space<vmem>>, vector<1x128xf32>
      %39 = vector.broadcast %38 : vector<1x128xf32> to vector<8x128xf32>
      %40 = arith.addf %37, %39 : vector<8x128xf32>
      %c0_26 = arith.constant 0 : index
      %c0_27 = arith.constant 0 : index
      %41 = vector.load %arg7[%c0_26, %c0_27] : memref<8x128xf32, #tpu.memory_space<vmem>>, vector<8x128xf32>
      tpu.vector_store %arg7[%c0_26, %c0_27], %40 {strides = array<i32>} : memref<8x128xf32, #tpu.memory_space<vmem>>, vector<8x128xf32>,
    } else {
    }
    return
  }
  func.func @transform_0(%arg0: i32, %arg1: i32, %arg2: i32) -> i32 {
    %c0_i32 = arith.constant 0 : i32
    %c0_i32_0 = arith.constant 0 : i32
    return %c0_i32 : i32
  }
  func.func @transform_1(%arg0: i32, %arg1: i32, %arg2: i32) -> (i32, i32) {
    %c0_i32 = arith.constant 0 : i32
    return %arg0, %arg2 : i32, i32
  }
  func.func @transform_2(%arg0: i32, %arg1: i32, %arg2: i32) -> (i32, i32) {
    %c0_i32 = arith.constant 0 : i32
    return %arg2, %arg1 : i32, i32
  }
  func.func @transform_3(%arg0: i32, %arg1: i32, %arg2: i32) -> (i32, i32) {
    %c0_i32 = arith.constant 0 : i32
    %c0_i32_0 = arith.constant 0 : i32
    return %c0_i32, %arg1 : i32, i32
  }
  func.func @transform_4(%arg0: i32, %arg1: i32, %arg2: i32) -> (i32, i32) {
    %c0_i32 = arith.constant 0 : i32
    return %arg0, %arg1 : i32, i32
  }
  func.func @transform_5(%arg0: i32, %arg1: i32, %arg2: i32) -> (i32, i32) {
    %c0_i32 = arith.constant 0 : i32
    return %arg0, %arg1 : i32, i32
  }
}

</mosaic_0001>

<bundles_post_ra>
// kernel: t_forward.1
= control target key start
LH: loop header
LB: loop body
LE: loop exit
PB: predicated region body
PF: predicated region fallthrough
CT: control target
= control target key end

     0   :  { %v395_v1 = vmov 0.0|0.0   ;;  %vm396_vm0 = vmmov 0   ;;  %v397_v2 = vmov 0.0   ;;  %s550_s0 = inlined_call_operand.<no memory space> [shape: f32[1], index: 0, kind: input, shape index: {}]   ;;  %s551_s1 = inlined_call_operand.vmem [shape: f32[8,128], index: 1, kind: input, shape index: {}]   ;;  %s552_s2 = inlined_call_operand.vmem [shape: f32[128,128], index: 2, kind: input, shape index: {}]   ;;  %s553_s3 = inlined_call_operand.vmem [shape: f32[1,128], index: 3, kind: input, shape index: {}]   ;;  %s554_s4 = inlined_call_operand.hbm [shape: f32[8,128], index: 4, kind: output, shape index: {0}]   ;;  %s555_s5 = inlined_call_operand.vmem [shape: f32[8,128], index: 5, kind: output, shape index: {1}]  }
   0x1   :  { %v432_v0 = vstv %s550_s0  ;;  %323 = vmatprep.subr.bf16.mxu0 %v395_v1  ;;  %320 = vmatprep.mubr.msk.f32.mxu0 %vm396_vm0, %v397_v2  ;;  %v439_v3 = vld [vmem:[%s551_s1] sm:$0xff] }
   0x2   :  { %369 = vrcp.f32 %v432_v0 }
   0x3   :  { %12 = vsyncpa [#allocation5], 0  ;;  %v203_v4 = vand.u32 2147483647, %v439_v3  ;;  %v30_v6 = vld [vmem:[%s552_s2] sm:$0xff]  ;;  %v31_v7 = vld [vmem:[%s552_s2 + $0x8] sm:$0xff] }
   0x4   :  { %v32_v8 = vld [vmem:[%s552_s2 + $0x10] sm:$0xff]  ;;  %v33_v9 = vld [vmem:[%s552_s2 + $0x18] sm:$0xff]  ;;  %v34_v10 = vld [vmem:[%s552_s2 + $0x20] sm:$0xff]  ;;  %s398_s29 = smov [#allocation4]  }
   0x5   :  { %204 = vmax.xlane.f32.xlu0 %v203_v4  ;;  %v35_v11 = vld [vmem:[%s552_s2 + $0x28] sm:$0xff]  ;;  %v36_v12 = vld [vmem:[%s552_s2 + $0x30] sm:$0xff]  ;;  %v37_v13 = vld [vmem:[%s552_s2 + $0x38] sm:$0xff] }
   0x6   :  { %v38_v33 = vld [vmem:[%s552_s2 + $0x40] sm:$0xff]  ;;  %v39_v34 = vld [vmem:[%s552_s2 + $0x48] sm:$0xff]  ;;  %v40_v46 = vld [vmem:[%s552_s2 + $0x50] sm:$0xff] }
   0x7   :  { %v41_v47 = vld [vmem:[%s552_s2 + $0x58] sm:$0xff]  ;;  %v42_v57 = vld [vmem:[%s552_s2 + $0x60] sm:$0xff]  ;;  %v43_v58 = vld [vmem:[%s552_s2 + $0x68] sm:$0xff] }
   0xc   :  { %v370_v5 = vpop.eup %369 }
   0xd   :  { %347 = vpush %v370_v5 }
  0x3e   :  { %s348_s30 = spop %347 }
  0x3f   :  { %v466_v14 = vstv %s348_s30  ;;  %s242_s30 = sshll.u32 %s398_s29, 4  ;;  %s243_s30 = int_to_ptr.vmem [resolvable:$true] %s242_s30 }
  0x40   :  { %v47_v15 = vmul.f32 %v466_v14, %v30_v6  ;;  %v48_v16 = vmul.f32 %v466_v14, %v31_v7  ;;  %v49_v17 = vmul.f32 %v466_v14, %v32_v8  ;;  %v50_v18 = vmul.f32 %v466_v14, %v33_v9  ;;  %v44_v7 = vld [vmem:[%s552_s2 + $0x70] sm:$0xff]  ;;  %v45_v8 = vld [vmem:[%s552_s2 + $0x78] sm:$0xff]  ;;  %s371_s6 = scalar_lea.vmem %s243_s30, 128  ;;  %p376_p1 = scmp.lt.s32.totalorder %s243_s30, %s243_s30 }
  0x41   :  { %v51_v19 = vmul.f32 %v466_v14, %v34_v10  ;;  %v52_v20 = vmul.f32 %v466_v14, %v35_v11  ;;  %v53_v21 = vmul.f32 %v466_v14, %v36_v12  ;;  %v54_v22 = vmul.f32 %v466_v14, %v37_v13  ;;  %p372_p0 = scmp.ne.s32.totalorder %s243_s30, %s371_s6  ;;  %p377_p2 = scmp.lt.s32.totalorder %s371_s6, %s371_s6 }
  0x42   :  { %v349_v23 = vround.rtne.f32 %v47_v15  ;;  %v350_v24 = vround.rtne.f32 %v48_v16  ;;  %v351_v25 = vround.rtne.f32 %v49_v17  ;;  %v352_v26 = vround.rtne.f32 %v50_v18 }
  0x43   :  { %v353_v27 = vround.rtne.f32 %v51_v19  ;;  %v354_v28 = vround.rtne.f32 %v52_v20  ;;  %v355_v37 = vround.rtne.f32 %v53_v21  ;;  %v356_v38 = vround.rtne.f32 %v54_v22  ;;  %p378_p3 = por %p377_p2, %p376_p1 }
  0x44   :  { %v254_v29 = vclamps-f32 %v349_v23, 127.0  ;;  %v255_v30 = vclamps-f32 %v350_v24, 127.0  ;;  %v256_v31 = vclamps-f32 %v351_v25, 127.0  ;;  %v257_v32 = vclamps-f32 %v352_v26, 127.0 }
  0x45   :  { %v258_v41 = vclamps-f32 %v353_v27, 127.0  ;;  %v259_v42 = vclamps-f32 %v354_v28, 127.0  ;;  %v55_v44 = vmul.f32 %v466_v14, %v38_v33  ;;  %v56_v45 = vmul.f32 %v466_v14, %v39_v34  ;;  %p379_p4 = pnand %p378_p3, %p372_p0 }
  0x46   :  { %v114_v35 = vmul.f32 %v254_v29, %v432_v0  ;;  %v115_v36 = vmul.f32 %v255_v30, %v432_v0  ;;  %v116_v39 = vmul.f32 %v256_v31, %v432_v0  ;;  %v117_v40 = vmul.f32 %v257_v32, %v432_v0 }
  0x47   :  { %v260_v48 = vclamps-f32 %v355_v37, 127.0  ;;  %v261_v49 = vclamps-f32 %v356_v38, 127.0  ;;  %v118_v51 = vmul.f32 %v258_v41, %v432_v0  ;;  %v119_v52 = vmul.f32 %v259_v42, %v432_v0 }
  0x48   :  { %v324_v43 = vpack.c.bf16 %v115_v36, %v114_v35  ;;  %v327_v50 = vpack.c.bf16 %v117_v40, %v116_v39  ;;  %v357_v53 = vround.rtne.f32 %v55_v44  ;;  %v358_v54 = vround.rtne.f32 %v56_v45 }
  0x49   :  { %v57_v55 = vmul.f32 %v466_v14, %v40_v46  ;;  %v58_v56 = vmul.f32 %v466_v14, %v41_v47  ;;  %v120_v59 = vmul.f32 %v260_v48, %v432_v0  ;;  %v121_v60 = vmul.f32 %v261_v49, %v432_v0 }
  0x4a   :  { %325 = vmatpush3.bf16.msra.mxu0 %v324_v43  ;;  %v330_v61 = vpack.c.bf16 %v119_v52, %v118_v51  ;;  %v59_v62 = vmul.f32 %v466_v14, %v42_v57  ;;  %v60_v63 = vmul.f32 %v466_v14, %v43_v58  ;;  %v262_v2 = vclamps-f32 %v357_v53, 127.0 }
  0x4b   :  { %326 = vmatprep.subr.bf16.mxu0 %v395_v1  ;;  %v263_v4 = vclamps-f32 %v358_v54, 127.0  ;;  %v359_v5 = vround.rtne.f32 %v57_v55  ;;  %v360_v6 = vround.rtne.f32 %v58_v56  ;;  %v333_v9 = vpack.c.bf16 %v121_v60, %v120_v59 }
  0x4c   :  { %v361_v10 = vround.rtne.f32 %v59_v62  ;;  %v362_v11 = vround.rtne.f32 %v60_v63  ;;  %v61_v12 = vmul.f32 %v466_v14, %v44_v7  ;;  %v62_v13 = vmul.f32 %v466_v14, %v45_v8 }
  0x4d   :  { %v122_v15 = vmul.f32 %v262_v2, %v432_v0  ;;  %v123_v16 = vmul.f32 %v263_v4, %v432_v0  ;;  %v264_v17 = vclamps-f32 %v359_v5, 127.0  ;;  %v265_v18 = vclamps-f32 %v360_v6, 127.0 }
  0x4e   :  { %328 = vmatpush3.bf16.msra.mxu0 %v327_v50  ;;  %v266_v19 = vclamps-f32 %v361_v10, 127.0  ;;  %v363_v20 = vround.rtne.f32 %v61_v12  ;;  %v364_v21 = vround.rtne.f32 %v62_v13  ;;  %v267_v25 = vclamps-f32 %v362_v11, 127.0 }
  0x4f   :  { %329 = vmatprep.subr.bf16.mxu0 %v395_v1  ;;  %v336_v22 = vpack.c.bf16 %v123_v16, %v122_v15  ;;  %v124_v23 = vmul.f32 %v264_v17, %v432_v0  ;;  %v125_v24 = vmul.f32 %v265_v18, %v432_v0 }
  0x50   :  { %v268_v14 = vclamps-f32 %v363_v20, 127.0  ;;  %v126_v27 = vmul.f32 %v266_v19, %v432_v0  ;;  %v127_v28 = vmul.f32 %v267_v25, %v432_v0  ;;  %v269_v29 = vclamps-f32 %v364_v21, 127.0 }
  0x51   :  { %v339_v26 = vpack.c.bf16 %v125_v24, %v124_v23 }
  0x52   :  { %331 = vmatpush3.bf16.msra.mxu0 %v330_v61  ;;  %v342_v30 = vpack.c.bf16 %v127_v28, %v126_v27  ;;  %v128_v31 = vmul.f32 %v268_v14, %v432_v0  ;;  %v129_v32 = vmul.f32 %v269_v29, %v432_v0  ;;  %v270_v0 = vld [vmem:[%s553_s3] ss:$0 sm:$0xff] }
  0x53   :  { %332 = vmatprep.subr.bf16.mxu0 %v395_v1 }
  0x54   :  { %v345_v33 = vpack.c.bf16 %v129_v32, %v128_v31 }
  0x56   :  { %334 = vmatpush3.bf16.msra.mxu0 %v333_v9 }
  0x57   :  { %335 = vmatprep.subr.bf16.mxu0 %v395_v1 }
  0x5a   :  { %337 = vmatpush3.bf16.msra.mxu0 %v336_v22 }
  0x5b   :  { %338 = vmatprep.subr.bf16.mxu0 %v395_v1 }
  0x5e   :  { %340 = vmatpush3.bf16.msra.mxu0 %v339_v26 }
  0x5f   :  { %341 = vmatprep.subr.bf16.mxu0 %v395_v1 }
  0x62   :  { %343 = vmatpush3.bf16.msra.mxu0 %v342_v30 }
  0x63   :  { %344 = vmatprep.subr.bf16.mxu0 %v395_v1 }
  0x66   :  { %346 = vmatpush3.bf16.msra.mxu0 %v345_v33 }
  0x69   :  { %321 = vmatmul.mubr.f32.vlgmr.msra.gmra.mrb[0].mxu0 %v439_v3 }
  0x92   :  { %v205_v34 = vpop.xlane.xlu0 %204 }
  0x93   :  { %v206_v35 = vrot.slane %v205_v34, 4 }
  0x95   :  { %v207_v36 = vmax.f32 %v205_v34, %v206_v35 }
  0x97   :  { %v208_v37 = vrot.slane %v207_v36, 2 }
  0x99   :  { %v209_v38 = vmax.f32 %v207_v36, %v208_v37 }
  0x9b   :  { %v210_v39 = vrot.slane %v209_v38, 1 }
  0x9d   :  { %v211_v40 = vmax.f32 %v209_v38, %v210_v39 }
  0x9f   :  { %215 = vst [vmem:[%s555_s5] sm:$0xff] %v211_v40 }
 0x13c   :  { %v196_v1 = vpop.f32.mrb[0].mxu0 }
 0x13d   :  { %v234_v41 = vadd.f32 %v270_v0, %v196_v1  ;;  %v322_v3 = vpop.f32.mrb[1].mxu0 }
 0x13f   :  { %235 = vst [vmem:[#allocation4] sm:$0xff] %v234_v41 }
 0x140   :  { %382 = shalt.err (!%p379_p4)
}
 0x141   :  { %s383_s8 = scalar_lea.hbm %s554_s4, 128 }
 0x142   :  { %p384_p5 = scmp.ne.s32.totalorder %s554_s4, %s383_s8  ;;  %p387_p6 = scmp.lt.u32.totalorder %s383_s8, %s554_s4 }
 0x144   :  { %p389_p7 = pnand %p387_p6, %p384_p5 }
 0x146   :  { %392 = shalt.err (!%p389_p7)
}
 0x147   :  { %245 = dma.vmem_to_hbm [thread:$0]  %s243_s30, 128, %s554_s4, [#allocation5]  }
 0x148   :  { %393 = dma.done.wait [#allocation5], 128  }
 0x149   :  { %394 = vsyncadd [#allocation5], 4294967168 }
 0x14a   :  { %253 = vsyncpa [#allocation5], 1 }

</bundles_post_ra>
